<compile_context>
chip_gen: v7x
topology: tpu7x:2x2x1
jax: 0.10.0
libtpu: 0.0.40
codegen_flags: <defaults>
</compile_context>

<pallas_src>
import functools

import jax
import jax.numpy as jnp
from jax import lax
from jax.experimental import pallas as pl
from jax.experimental.pallas import tpu as pltpu

_LANES = 128
_ROW_MULT = {4: 8, 2: 16, 1: 32}   # sublane packing multiple per itemsize


def _ce_ls_kernel(logits_ref, tgt_logit_ref, partial_ref,
                  m_sc, se_sc, sx_sc, *,
                  epsilon, num_classes, batch_size,
                  block_b, block_k, mask_rows, mask_cols):
    """Grid = (batch tiles, class tiles).  Online LSE over the class axis."""
    bi = pl.program_id(0)
    ki = pl.program_id(1)
    nk = pl.num_programs(1)

    @pl.when(ki == 0)
    def _():
        m_sc[...] = jnp.full(m_sc.shape, -jnp.inf, dtype=jnp.float32)
        se_sc[...] = jnp.zeros(se_sc.shape, dtype=jnp.float32)
        sx_sc[...] = jnp.zeros(sx_sc.shape, dtype=jnp.float32)

    x = logits_ref[...].astype(jnp.float32)          # (TB, TK), cast in-kernel
    tb, tk = x.shape

    if mask_cols:
        # Only emitted when K % block_k != 0: mask garbage lanes of the last
        # (grid-level OOB) class tile.
        cid = ki * block_k + lax.broadcasted_iota(jnp.int32, (tb, tk), 1)
        col_ok = cid < num_classes
        x_max_src = jnp.where(col_ok, x, -jnp.inf)
        x_sum_src = jnp.where(col_ok, x, 0.0)
    else:
        x_max_src = x
        x_sum_src = x

    # Online logsumexp update (per row; no cross-row reduction here).
    m_prev = m_sc[...]
    m_new = jnp.maximum(m_prev, jnp.max(x_max_src, axis=1, keepdims=True))
    alpha = jnp.exp(m_prev - m_new)
    se_sc[...] = alpha * se_sc[...] + jnp.sum(jnp.exp(x_max_src - m_new),
                                              axis=1, keepdims=True)
    sx_sc[...] = sx_sc[...] + jnp.sum(x_sum_src, axis=1, keepdims=True)
    m_sc[...] = m_new

    @pl.when(ki == nk - 1)
    def _():
        lse = m_sc[...] + jnp.log(se_sc[...])                         # (TB, 1)
        logp_tgt = tgt_logit_ref[...] - lse                           # (TB, 1)
        sum_logp = sx_sc[...] - jnp.float32(num_classes) * lse        # (TB, 1)
        per_row = (-(1.0 - epsilon)) * logp_tgt \
            - (epsilon / num_classes) * sum_logp                      # (TB, 1)

        if mask_rows:
            # Only emitted when B % block_b != 0: mask padded tail rows BEFORE
            # the cross-row sum (also squashes NaN/Inf from garbage rows).
            row_ids = bi * block_b + lax.broadcasted_iota(jnp.int32, (tb, 1), 0)
            per_row = jnp.where(row_ids < batch_size, per_row, 0.0)

        # Lane-dense, unmasked store of the per-tile partial sum.
        partial_ref[...] = jnp.full(partial_ref.shape, jnp.sum(per_row),
                                    dtype=jnp.float32)


def _tpu_vmem_capacity_bytes():
    """Per-TensorCore VMEM capacity; conservative (v7x) fallback if unknown."""
    try:
        info = pltpu.get_tpu_info()
        cap = getattr(info, "vmem_capacity_bytes", None)
        if cap:
            return int(cap)
    except Exception:
        pass
    return 64 * 1024 * 1024


def _pick_tiles(batch, classes, itemsize, block_b, block_k):
    """Generation-aware tile sizing with honest VMEM accounting.

    Resident per grid step ~= 2*TB*TK*itemsize (double-buffered native input)
                            + 3*TB*TK*4       (in-kernel f32 temporaries)
    """
    vmem_cap = _tpu_vmem_capacity_bytes()
    if vmem_cap <= 64 * 1024 * 1024:          # v7x-class: 64 MiB per TensorCore
        resident_budget = 12 * 1024 * 1024
        vmem_limit = 48 * 1024 * 1024
    else:                                      # v5e / v6e: 128 MiB physical
        resident_budget = 32 * 1024 * 1024
        vmem_limit = 64 * 1024 * 1024

    row_mult = _ROW_MULT.get(itemsize, 8)
    per_elem = 2 * itemsize + 3 * 4

    # --- class (K) tile ---
    if block_k is None:
        rows_with_full_k = resident_budget // (classes * per_elem)
        if rows_with_full_k >= row_mult:
            block_k = classes                   # whole class row fits per tile
        else:                                   # vocab-scale K: tile classes
            tk = resident_budget // (row_mult * per_elem)
            block_k = max(_LANES, (tk // _LANES) * _LANES)
    block_k = min(int(block_k), classes)
    if block_k < classes:
        assert block_k % _LANES == 0, "block_k must be a multiple of 128 (or >= K)"

    # --- batch (B) tile ---
    if block_b is None:
        tb = resident_budget // (block_k * per_elem)
        if tb >= batch:
            block_b = batch
        else:
            block_b = max(row_mult, (tb // row_mult) * row_mult)
    block_b = min(int(block_b), batch)
    if block_b < batch:
        assert block_b % row_mult == 0, (
            f"block_b must be a multiple of {row_mult} for this dtype (or >= B)")

    return block_b, block_k, int(vmem_limit)


def cross_entropy_label_smooth(logits, targets, *, num_classes, epsilon=0.1,
                               block_b=None, block_k=None):
    """logits: (B, K) float (any float dtype), targets: (B,) int -> scalar f32."""
    B, K = logits.shape
    assert K == num_classes
    itemsize = jnp.dtype(logits.dtype).itemsize
    block_b, block_k, vmem_limit = _pick_tiles(B, K, itemsize, block_b, block_k)

    # Gather the target logit in the wrapper (tiny (B,1) f32 array) so the
    # kernel never builds the (TB,K) iota/compare/select.
    # TODO(synk): out-of-range targets are clipped by take_along_axis rather
    # than raising like PyTorch's scatter would.
    tgt_logit = jnp.take_along_axis(
        logits, targets.astype(jnp.int32).reshape(B, 1), axis=1
    ).astype(jnp.float32)

    nb = pl.cdiv(B, block_b)
    nk = pl.cdiv(K, block_k)
    mask_rows = (B % block_b) != 0
    mask_cols = (K % block_k) != 0

    kernel = functools.partial(
        _ce_ls_kernel,
        epsilon=float(epsilon),
        num_classes=int(num_classes),
        batch_size=int(B),
        block_b=int(block_b),
        block_k=int(block_k),
        mask_rows=bool(mask_rows),
        mask_cols=bool(mask_cols),
    )

    out = pl.pallas_call(
        kernel,
        out_shape=jax.ShapeDtypeStruct((1, nb * _LANES), jnp.float32),
        grid_spec=pltpu.PrefetchScalarGridSpec(
            num_scalar_prefetch=0,
            grid=(nb, nk),
            in_specs=[
                pl.BlockSpec((block_b, block_k), lambda bi, ki: (bi, ki)),
                pl.BlockSpec((block_b, 1), lambda bi, ki: (bi, 0)),
            ],
            out_specs=pl.BlockSpec((1, _LANES), lambda bi, ki: (0, bi)),
            scratch_shapes=[pltpu.VMEM((block_b, 1), jnp.float32)] * 3,
        ),
        compiler_params=pltpu.CompilerParams(
            dimension_semantics=("parallel", "arbitrary"),
            vmem_limit_bytes=vmem_limit,
        ),
    )(logits, tgt_logit)

    partials = out.reshape(nb, _LANES)[:, 0]     # one partial per batch tile
    return jnp.sum(partials) / jnp.float32(B)


def _reference(logits, targets, num_classes, epsilon=0.1):
    # Pure-JAX reference matching the PyTorch module.
    log_probs = jax.nn.log_softmax(logits.astype(jnp.float32), axis=1)
    onehot = jax.nn.one_hot(targets, num_classes, dtype=jnp.float32)
    t = (1.0 - epsilon) * onehot + epsilon / num_classes
    return jnp.sum(jnp.mean(-t * log_probs, axis=0))


if __name__ == "__main__":
    key = jax.random.PRNGKey(0)
    k1, k2, k3, k4 = jax.random.split(key, 4)

    # --- Test 1: f32, B not a multiple of the batch tile (tail-row mask). ---
    B, K = 20, 32
    logits = jax.random.normal(k1, (B, K), dtype=jnp.float32)
    targets = jax.random.randint(k2, (B,), 0, K, dtype=jnp.int32)
    loss = cross_entropy_label_smooth(logits, targets, num_classes=K,
                                      epsilon=0.1, block_b=8)
    loss = jax.block_until_ready(loss)
    ref = _reference(logits, targets, K, 0.1)
    assert jnp.allclose(loss, ref, atol=1e-5, rtol=1e-5), (loss, ref)

    # --- Test 2: native bf16 input, packed-sublane batch tile of 16. ---
    logits_bf16 = logits.astype(jnp.bfloat16)
    loss_bf16 = cross_entropy_label_smooth(logits_bf16, targets, num_classes=K,
                                           epsilon=0.1, block_b=16)
    loss_bf16 = jax.block_until_ready(loss_bf16)
    ref_bf16 = _reference(logits_bf16.astype(jnp.float32), targets, K, 0.1)
    assert jnp.allclose(loss_bf16, ref_bf16, atol=1e-4, rtol=1e-4), (loss_bf16, ref_bf16)

    # --- Test 3: K=1000 (not a multiple of 128), single full-K tile. ---
    B2, K2 = 12, 1000
    logits2 = jax.random.normal(k3, (B2, K2), dtype=jnp.float32)
    targets2 = jax.random.randint(k4, (B2,), 0, K2, dtype=jnp.int32)
    loss2 = cross_entropy_label_smooth(logits2, targets2, num_classes=K2,
                                       epsilon=0.1)
    loss2 = jax.block_until_ready(loss2)
    ref2 = _reference(logits2, targets2, K2, 0.1)
    assert jnp.allclose(loss2, ref2, atol=1e-4, rtol=1e-4), (loss2, ref2)

    # --- Test 4: K-tiled online-LSE path (class tail + row tail masks). ---
    loss2t = cross_entropy_label_smooth(logits2, targets2, num_classes=K2,
                                        epsilon=0.1, block_b=8, block_k=256)
    loss2t = jax.block_until_ready(loss2t)
    assert jnp.allclose(loss2t, ref2, atol=1e-4, rtol=1e-4), (loss2t, ref2)

    print("KERNEL_OK")
</pallas_src>

<mosaic_0001>
module attributes {stable_mosaic.version = 11 : i64} {
  func.func @_ce_ls_kernel(%arg0: i32, %arg1: i32, %arg2: memref<8x32xf32, #tpu.memory_space<vmem>>, %arg3: memref<8x1xf32, #tpu.memory_space<vmem>>, %arg4: memref<1x128xf32, #tpu.memory_space<vmem>>, %arg5: memref<8x1xf32, #tpu.memory_space<vmem>>, %arg6: memref<8x1xf32, #tpu.memory_space<vmem>>, %arg7: memref<8x1xf32, #tpu.memory_space<vmem>>) attributes {dimension_semantics = [#tpu.dimension_semantics<parallel>, #tpu.dimension_semantics<arbitrary>], iteration_bounds = array<i64: 3, 1>, scalar_prefetch = 0 : i64, scratch_operands = 3 : i64, tpu.core_type = #tpu.core_type<tc>, window_params = [{transform_indices = @transform_0, window_bounds = array<i64: 8, 32>}, {transform_indices = @transform_1, window_bounds = array<i64: 8, 1>}, {transform_indices = @transform_2, window_bounds = array<i64: 1, 128>}]} {
    %c0_i32 = arith.constant 0 : i32
    %0 = arith.cmpi eq, %arg1, %c0_i32 : i32
    %1 = arith.extui %0 : i1 to i32
    %c0_i32_0 = arith.constant 0 : i32
    %2 = arith.cmpi ne, %1, %c0_i32_0 : i32
    scf.if %2 {
      %cst_18 = arith.constant 0xFF800000 : f32
      %28 = vector.broadcast %cst_18 : f32 to vector<8x1xf32>
      %c0_19 = arith.constant 0 : index
      %c0_20 = arith.constant 0 : index
      %29 = vector.load %arg5[%c0_19, %c0_20] : memref<8x1xf32, #tpu.memory_space<vmem>>, vector<8x1xf32>
      tpu.vector_store %arg5[%c0_19, %c0_20], %28 {strides = array<i32>} : memref<8x1xf32, #tpu.memory_space<vmem>>, vector<8x1xf32>,
      %cst_21 = arith.constant 0.000000e+00 : f32
      %30 = vector.broadcast %cst_21 : f32 to vector<8x1xf32>
      %c0_22 = arith.constant 0 : index
      %c0_23 = arith.constant 0 : index
      %31 = vector.load %arg6[%c0_22, %c0_23] : memref<8x1xf32, #tpu.memory_space<vmem>>, vector<8x1xf32>
      tpu.vector_store %arg6[%c0_22, %c0_23], %30 {strides = array<i32>} : memref<8x1xf32, #tpu.memory_space<vmem>>, vector<8x1xf32>,
      %cst_24 = arith.constant 0.000000e+00 : f32
      %32 = vector.broadcast %cst_24 : f32 to vector<8x1xf32>
      %c0_25 = arith.constant 0 : index
      %c0_26 = arith.constant 0 : index
      %33 = vector.load %arg7[%c0_25, %c0_26] : memref<8x1xf32, #tpu.memory_space<vmem>>, vector<8x1xf32>
      tpu.vector_store %arg7[%c0_25, %c0_26], %32 {strides = array<i32>} : memref<8x1xf32, #tpu.memory_space<vmem>>, vector<8x1xf32>,
    } else {
    }
    %c0 = arith.constant 0 : index
    %c0_1 = arith.constant 0 : index
    %3 = vector.load %arg2[%c0, %c0_1] : memref<8x32xf32, #tpu.memory_space<vmem>>, vector<8x32xf32>
    %c0_2 = arith.constant 0 : index
    %c0_3 = arith.constant 0 : index
    %4 = vector.load %arg5[%c0_2, %c0_3] : memref<8x1xf32, #tpu.memory_space<vmem>>, vector<8x1xf32>
    %cst = arith.constant dense<0xFF800000> : vector<8xf32>
    %5 = vector.multi_reduction <maximumf>, %3, %cst [1] : vector<8x32xf32> to vector<8xf32>
    %6 = vector.shape_cast %5 : vector<8xf32> to vector<8x1xf32>
    %7 = arith.maximumf %4, %6 : vector<8x1xf32>
    %8 = arith.subf %4, %7 : vector<8x1xf32>
    %9 = math.exp %8 : vector<8x1xf32>
    %c0_4 = arith.constant 0 : index
    %c0_5 = arith.constant 0 : index
    %10 = vector.load %arg6[%c0_4, %c0_5] : memref<8x1xf32, #tpu.memory_space<vmem>>, vector<8x1xf32>
    %11 = arith.mulf %9, %10 : vector<8x1xf32>
    %12 = vector.broadcast %7 : vector<8x1xf32> to vector<8x32xf32>
    %13 = arith.subf %3, %12 : vector<8x32xf32>
    %14 = math.exp %13 : vector<8x32xf32>
    %cst_6 = arith.constant dense<0.000000e+00> : vector<8xf32>
    %15 = vector.multi_reduction <add>, %14, %cst_6 [1] : vector<8x32xf32> to vector<8xf32>
    %16 = vector.shape_cast %15 : vector<8xf32> to vector<8x1xf32>
    %17 = arith.addf %11, %16 : vector<8x1xf32>
    %c0_7 = arith.constant 0 : index
    %c0_8 = arith.constant 0 : index
    %18 = vector.load %arg6[%c0_7, %c0_8] : memref<8x1xf32, #tpu.memory_space<vmem>>, vector<8x1xf32>
    tpu.vector_store %arg6[%c0_7, %c0_8], %17 {strides = array<i32>} : memref<8x1xf32, #tpu.memory_space<vmem>>, vector<8x1xf32>,
    %c0_9 = arith.constant 0 : index
    %c0_10 = arith.constant 0 : index
    %19 = vector.load %arg7[%c0_9, %c0_10] : memref<8x1xf32, #tpu.memory_space<vmem>>, vector<8x1xf32>
    %cst_11 = arith.constant dense<0.000000e+00> : vector<8xf32>
    %20 = vector.multi_reduction <add>, %3, %cst_11 [1] : vector<8x32xf32> to vector<8xf32>
    %21 = vector.shape_cast %20 : vector<8xf32> to vector<8x1xf32>
    %22 = arith.addf %19, %21 : vector<8x1xf32>
    %c0_12 = arith.constant 0 : index
    %c0_13 = arith.constant 0 : index
    %23 = vector.load %arg7[%c0_12, %c0_13] : memref<8x1xf32, #tpu.memory_space<vmem>>, vector<8x1xf32>
    tpu.vector_store %arg7[%c0_12, %c0_13], %22 {strides = array<i32>} : memref<8x1xf32, #tpu.memory_space<vmem>>, vector<8x1xf32>,
    %c0_14 = arith.constant 0 : index
    %c0_15 = arith.constant 0 : index
    %24 = vector.load %arg5[%c0_14, %c0_15] : memref<8x1xf32, #tpu.memory_space<vmem>>, vector<8x1xf32>
    tpu.vector_store %arg5[%c0_14, %c0_15], %7 {strides = array<i32>} : memref<8x1xf32, #tpu.memory_space<vmem>>, vector<8x1xf32>,
    %c0_i32_16 = arith.constant 0 : i32
    %25 = arith.cmpi eq, %arg1, %c0_i32_16 : i32
    %26 = arith.extui %25 : i1 to i32
    %c0_i32_17 = arith.constant 0 : i32
    %27 = arith.cmpi ne, %26, %c0_i32_17 : i32
    scf.if %27 {
      %c0_18 = arith.constant 0 : index
      %c0_19 = arith.constant 0 : index
      %28 = vector.load %arg5[%c0_18, %c0_19] : memref<8x1xf32, #tpu.memory_space<vmem>>, vector<8x1xf32>
      %c0_20 = arith.constant 0 : index
      %c0_21 = arith.constant 0 : index
      %29 = vector.load %arg6[%c0_20, %c0_21] : memref<8x1xf32, #tpu.memory_space<vmem>>, vector<8x1xf32>
      %30 = math.log %29 : vector<8x1xf32>
      %31 = arith.addf %28, %30 : vector<8x1xf32>
      %c0_22 = arith.constant 0 : index
      %c0_23 = arith.constant 0 : index
      %32 = vector.load %arg3[%c0_22, %c0_23] : memref<8x1xf32, #tpu.memory_space<vmem>>, vector<8x1xf32>
      %33 = arith.subf %32, %31 : vector<8x1xf32>
      %c0_24 = arith.constant 0 : index
      %c0_25 = arith.constant 0 : index
      %34 = vector.load %arg7[%c0_24, %c0_25] : memref<8x1xf32, #tpu.memory_space<vmem>>, vector<8x1xf32>
      %cst_26 = arith.constant 3.200000e+01 : f32
      %35 = vector.broadcast %cst_26 : f32 to vector<8x1xf32>
      %36 = arith.mulf %35, %31 : vector<8x1xf32>
      %37 = arith.subf %34, %36 : vector<8x1xf32>
      %cst_27 = arith.constant -0.899999976 : f32
      %38 = vector.broadcast %cst_27 : f32 to vector<8x1xf32>
      %39 = arith.mulf %38, %33 : vector<8x1xf32>
      %cst_28 = arith.constant 3.125000e-03 : f32
      %40 = vector.broadcast %cst_28 : f32 to vector<8x1xf32>
      %41 = arith.mulf %40, %37 : vector<8x1xf32>
      %42 = arith.subf %39, %41 : vector<8x1xf32>
      %c8_i32 = arith.constant 8 : i32
      %43 = arith.muli %arg0, %c8_i32 : i32
      %44 = tpu.iota {dimensions = array<i32: 0>} : vector<8x1xi32>
      %45 = vector.broadcast %43 : i32 to vector<8x1xi32>
      %46 = arith.addi %45, %44 : vector<8x1xi32>
      %c20_i32 = arith.constant 20 : i32
      %47 = vector.broadcast %c20_i32 : i32 to vector<8x1xi32>
      %48 = arith.cmpi slt, %46, %47 : vector<8x1xi32>
      %cst_29 = arith.constant 0.000000e+00 : f32
      %49 = vector.broadcast %cst_29 : f32 to vector<8x1xf32>
      %50 = arith.select %48, %42, %49 : vector<8x1xi1>, vector<8x1xf32>
      %51 = vector.shape_cast %50 : vector<8x1xf32> to vector<1x8x1xf32>
      %cst_30 = arith.constant dense<0.000000e+00> : vector<1xf32>
      %52 = vector.multi_reduction <add>, %51, %cst_30 [1, 2] : vector<1x8x1xf32> to vector<1xf32>
      %53 = vector.shape_cast %52 : vector<1xf32> to vector<1x1x1xf32>
      %54 = vector.extract %53[0, 0, 0] : f32 from vector<1x1x1xf32>
      %55 = vector.broadcast %54 : f32 to vector<1x128xf32>
      %c0_31 = arith.constant 0 : index
      %c0_32 = arith.constant 0 : index
      %56 = vector.load %arg4[%c0_31, %c0_32] : memref<1x128xf32, #tpu.memory_space<vmem>>, vector<1x128xf32>
      tpu.vector_store %arg4[%c0_31, %c0_32], %55 {strides = array<i32>} : memref<1x128xf32, #tpu.memory_space<vmem>>, vector<1x128xf32>,
    } else {
    }
    return
  }
  func.func @transform_0(%arg0: i32, %arg1: i32) -> (i32, i32) {
    %c0_i32 = arith.constant 0 : i32
    return %arg0, %arg1 : i32, i32
  }
  func.func @transform_1(%arg0: i32, %arg1: i32) -> (i32, i32) {
    %c0_i32 = arith.constant 0 : i32
    %c0_i32_0 = arith.constant 0 : i32
    return %arg0, %c0_i32 : i32, i32
  }
  func.func @transform_2(%arg0: i32, %arg1: i32) -> (i32, i32) {
    %c0_i32 = arith.constant 0 : i32
    %c0_i32_0 = arith.constant 0 : i32
    return %c0_i32, %arg0 : i32, i32
  }
}

</mosaic_0001>

<bundles_post_ra>
// kernel: tpu_custom_call.1
= control target key start
LH: loop header
LB: loop body
LE: loop exit
PB: predicated region body
PF: predicated region fallthrough
CT: control target
= control target key end

     0   :  { %7 = vsyncpa [#allocation6], 0  ;;  %s655_s0 = inlined_call_operand.vmem [shape: f32[20,32], index: 0, kind: input, shape index: {}]   ;;  %s656_s1 = inlined_call_operand.vmem [shape: f32[20,1], index: 1, kind: input, shape index: {}]   ;;  %s657_s2 = inlined_call_operand.hbm [shape: f32[1,384], index: 2, kind: output, shape index: {}]  }
   0x1   :  { %9 = vsyncpa [#allocation6 + $0x1], 0  ;;  %s522_s9 = smov 0   ;;  %s524_s10 = smov 0  }
   0x2   :  { %s526_s11 = smov 0   ;;  %s528_s12 = smov 0  }
   0x3   :  { %s530_s13 = smov 0   ;;  %s532_s14 = smov 0  }
   0x4 LB: > { %s345_s15 = sadd.s32 4294967295, %s501_s14   ;;  %s346_s16 = sadd.s32 4294967294, %s501_s14   ;;  %s501_s14 = sphi %s532_s14, %s15_s14   ;;  %s497_s13 = sphi %s530_s13, %s664_s13   ;;  %s493_s12 = sphi %s528_s12, %s663_s12   ;;  %s489_s11 = sphi %s526_s11, %s662_s11   ;;  %s485_s10 = sphi %s524_s10, %s661_s10   ;;  %s481_s9 = sphi %s522_s9, %s660_s9  }
   0x5   : > { %s27_s17 = sadd.s32 1, %s497_s13  ;;  %s88_s18 = sadd.s32 1, %s489_s11 }
   0x6   : > { %p29_p0 = scmp.ge.s32.totalorder %s27_s17, 3  ;;  %p98_p1 = scmp.ne.s32.totalorder %s489_s11, %s485_s10 }
   0x7   : > { %p99_p2 = scmp.eq.s32.totalorder %s345_s15, 2  ;;  %p104_p3 = scmp.ne.s32.totalorder %s485_s10, %s481_s9 }
   0x8   : > { %s666_s17 = smov (%p29_p0, %s27_s17), 0  ;;  %p105_p5 = scmp.eq.s32.totalorder %s346_s16, 2 }
   0x9   : > { %p562_p4 = por %p99_p2, %p98_p1  ;;  %s85_s20 = ssub.s32 %s497_s13, %s666_s17 }
   0xa   : > { %p349_p6 = scmp.ge.s32.totalorder %s501_s14, 1  ;;  %p86_p7 = scmp.eq.s32.totalorder %s85_s20, 0 }
   0xb   : > { %p569_p8 = por %p105_p5, %p104_p3  ;;  %p140_p9 = scmp.lt.s32.totalorder %s501_s14, 4 }
   0xc   : > { %s575_s22 = scalar_select %p86_p7, %s489_s11, %s88_s18  }
   0xd   : > { %p141_p10 = pnand %p349_p6, %p140_p9 }
   0xe   : > { %p167_p11 = scmp.lt.s32.totalorder (!%p141_p10), %s493_s12, 2  ;;  %vm182_vm0 = vcmask (!%p141_p10), 7168   ;;  %v503_v0 = vmov (!%p141_p10), -inf   ;;  %vm188_vm1 = vcmask (!%p141_p10), 261120   ;;  %v504_v3 = vmov (!%p141_p10), 0   ;;  %s352_s3 = sshll.u32 (!%p141_p10), %s493_s12, 3 }
   0xf   : > { %144 = sbr.rel (%p141_p10) target bundleno = 712 (0x2c8), region = 28  ;;  %183 = vst.msk [vmem:[#allocation2] sm:$0xff] (!%p141_p10), %vm182_vm0, %v503_v0  ;;  %416 = vset.pattern.permute.xlu0 (!%p141_p10), %v504_v3  ;;  %v505_v4 = vmov (!%p141_p10), 0.0   ;;  %v236_v25 = vlaneseq (!%p141_p10)  ;;  %v238_v32 = vstv (!%p141_p10), %s352_s3  ;;  %s165_s4 = sand.u32 (!%p141_p10), 1, %s485_s10  }
  0x10   : > { %184 = vst.msk [vmem:[#allocation3] sm:$0xff] (!%p141_p10), %vm182_vm0, %v505_v4  ;;  %185 = vst.msk [vmem:[#allocation4] sm:$0xff] (!%p141_p10), %vm182_vm0, %v505_v4  ;;  %s166_s5 = scalar_lea.vmem (!%p141_p10), [#allocation5], %s165_s4  ;;  %s353_s7 = sshll.u32 (!%p141_p10), %s493_s12, 4 }
  0x11   : > { %v237_v30 = vshrl.u32 (!%p141_p10), %v236_v25, 7  ;;  %s267_s6 = sshll.u32 (!%p141_p10), %s166_s5, 4  ;;  %s610_s18 = scalar_lea.hbm (!%p141_p10), %s657_s2, %s353_s7  ;;  %s605_s6 = int_to_ptr.vmem [resolvable:$true] %s267_s6 }
  0x12   : > { %s255_s20 = scalar_lea.sflag (!%p141_p10), [#allocation6], %s165_s4 }
  0x13   : > { %v239_v36 = vadd.s32 (!%p141_p10), %v238_v32, %v237_v30 }
  0x15   : > { %vm240_vm2 = vcmp.lt.s32.totalorder (!%p141_p10), %v239_v36, 20 }
  0x16   : > { %s580_s23 = scalar_select %p167_p11, %s493_s12, 2  ;;  %v187_v5 = vld [vmem:[#allocation2] sm:$0xff] }
  0x17   : > { %v196_v17 = vld [vmem:[#allocation3] sm:$0xff]  ;;  %v212_v21 = vld [vmem:[#allocation4] sm:$0xff]  ;;  %s506_s12 = smov [#allocation5]  }
  0x18   : > { %s350_s24 = sshll.u32 %s580_s23, 3  ;;  %s423_s23 = scalar_lea.vmem %s605_s6, 16 }
  0x19   : > { %s173_s27 = scalar_lea.vmem %s655_s0, %s350_s24  ;;  %s177_s30 = scalar_lea.vmem %s656_s1, %s350_s24 }
  0x1a   : > { %v186_v1 = vld [vmem:[%s173_s27] sm:$0xff]  ;;  %p424_p12 = scmp.ne.s32.totalorder %s605_s6, %s423_s23  ;;  %s427_s24 = sshll.u32 %s506_s12, 4  ;;  %s428_s24 = int_to_ptr.vmem [resolvable:$false] %s427_s24 }
  0x1b   : > { %v189_v2 = vsel %vm188_vm1, %v186_v1, -inf  ;;  %v213_v14 = vsel %vm188_vm1, %v186_v1, 0.0  ;;  %v227_v28 = vld [vmem:[%s177_s30] sm:$0xff]  ;;  %s429_s25 = scalar_lea.vmem %s428_s24, 32  ;;  %p430_p1 = scmp.lt.s32.totalorder %s605_s6, %s428_s24 }
  0x1c   : > { %190 = vmax.xlane.f32.xlu0 %v189_v2  ;;  %p425_p13 = pnand %p424_p12, %p562_p4  ;;  %p431_p2 = scmp.lt.s32.totalorder %s429_s25, %s423_s23 }
  0x1e   : > { %p426_p0 = pneg %p425_p13  ;;  %p432_p3 = por %p431_p2, %p430_p1 }
  0x20   : > { %p433_p5 = pnand %p432_p3, %p426_p0 }
  0xa9   : > { %v191_v6 = vpop.xlane.xlu0 %190 }
  0xaa   : > { %v192_v7 = vmax.f32 %v187_v5, %v191_v6 }
  0xac   : > { %v193_v8 = vsub.f32 %v187_v5, %v192_v7  ;;  %218 = vst.msk [vmem:[#allocation2] sm:$0xff] %vm182_vm0, %v192_v7  ;;  %200 = vperm.xlu0 %416, %v192_v7  }
  0xae   : > { %v194_v15 = vmul.f32 1.442695, %v193_v8 }
  0xb3   : > { %v222_v29 = vld [vmem:[#allocation2] sm:$0xff] }
 0x12b   : > { %v201_v9 = vpop.permute.xlu0 %200 }
 0x12c   : > { %v203_v10 = vsub.f32 %v186_v1, %v201_v9 }
 0x12e   : > { %v204_v11 = vmul.f32 1.442695, %v203_v10 }
 0x130   : > { %417 = vpow2.f32 %v204_v11 }
 0x131   : > { %419 = vpow2.f32 %v194_v15 }
 0x13a   : > { %v418_v12 = vpop.eup %417 }
 0x13b   : > { %v206_v13 = vsel %vm188_vm1, %v418_v12, 0.0  ;;  %v420_v16 = vpop.eup %419 }
 0x13c   : > { %207 = vadd.xlane.f32.xlu1 %v206_v13  ;;  %v197_v18 = vmul.f32 %v420_v16, %v196_v17 }
 0x140   : > { %214 = vadd.xlane.f32.xlu1 %v213_v14 }
 0x1c9   : > { %v208_v19 = vpop.xlane.xlu1 %207 }
 0x1ca   : > { %v209_v20 = vadd.f32 %v208_v19, %v197_v18 }
 0x1cc   : > { %211 = vst.msk [vmem:[#allocation3] sm:$0xff] %vm182_vm0, %v209_v20 }
 0x1cd   : > { %v215_v22 = vpop.xlane.xlu1 %214 }
 0x1ce   : > { %v216_v23 = vadd.f32 %v215_v22, %v212_v21 }
 0x1d0   : > { %217 = vst.msk [vmem:[#allocation4] sm:$0xff] %vm182_vm0, %v216_v23 }
 0x1d3   : > { %v223_v24 = vld [vmem:[#allocation3] sm:$0xff] }
 0x1d4   : > { %421 = vlog2.f32 %v223_v24 }
 0x1d7   : > { %v229_v33 = vld [vmem:[#allocation4] sm:$0xff] }
 0x1de   : > { %v422_v26 = vpop.eup %421 }
 0x1df   : > { %v225_v27 = vmul.f32 0.6931472, %v422_v26 }
 0x1e1   : > { %v226_v31 = vadd.f32 %v225_v27, %v222_v29 }
 0x1e3   : > { %v228_v34 = vsub.f32 %v227_v28, %v226_v31  ;;  %v230_v35 = vmul.f32 32.0, %v226_v31 }
 0x1e5   : > { %v231_v37 = vsub.f32 %v229_v33, %v230_v35  ;;  %v232_v38 = vmul.f32 -0.9, %v228_v34 }
 0x1e7   : > { %v233_v39 = vmul.f32 0.003125, %v231_v37 }
 0x1e9   : > { %v234_v40 = vsub.f32 %v232_v38, %v233_v39 }
 0x1eb   : > { %v241_v41 = vsel %vm240_vm2, %v234_v40, 0.0 }
 0x1ec   : > { %v242_v42 = vsel %vm182_vm0, %v241_v41, 0.0 }
 0x1ed   : > { %243 = vadd.xlane.f32.xlu1 %v242_v42 }
 0x27a   : > { %v244_v43 = vpop.xlane.xlu1 %243 }
 0x27b   : > { %v245_v44 = vrot.slane %v244_v43, 4 }
 0x27d   : > { %v246_v45 = vadd.f32 %v245_v44, %v244_v43 }
 0x27f   : > { %v247_v46 = vrot.slane %v246_v45, 2 }
 0x281   : > { %v248_v47 = vadd.f32 %v247_v46, %v246_v45 }
 0x283   : > { %v249_v48 = vrot.slane %v248_v47, 1 }
 0x285   : > { %v250_v49 = vadd.f32 %v249_v48, %v248_v47 }
 0x287   : > { %356 = vpush %v250_v49 }
 0x2b8   : > { %s357_s8 = spop %356 }
 0x2b9   : > { %v252_v50 = vstv %s357_s8 }
 0x2ba   : > { %253 = vst [vmem:[%s166_s5] sm:$0x1] %v252_v50 }
 0x2bb   : > { %436 = shalt.err (!%p433_p5)
}
 0x2bc   : > { %s437_s26 = scalar_lea.hbm %s610_s18, 16  ;;  %s441_s29 = scalar_lea.hbm %s657_s2, 48 }
 0x2bd   : > { %p438_p6 = scmp.ne.s32.totalorder %s610_s18, %s437_s26  ;;  %p442_p10 = scmp.lt.u32.totalorder %s610_s18, %s657_s2 }
 0x2be   : > { %p443_p11 = scmp.lt.u32.totalorder %s441_s29, %s437_s26  ;;  %p445_p13 = scmp.lt.u32.totalorder %s437_s26, %s610_s18 }
 0x2bf   : > { %p439_p7 = pnand %p438_p6, %p562_p4 }
 0x2c0   : > { %p444_p12 = por %p443_p11, %p442_p10 }
 0x2c1   : > { %p440_p9 = pneg %p439_p7 }
 0x2c2   : > { %p446_p0 = por %p445_p13, %p444_p12 }
 0x2c4   : > { %p447_p1 = pnand %p446_p0, %p440_p9 }
 0x2c6   : > { %450 = shalt.err (!%p447_p1)
}
 0x2c7   : > { %358 = dma.vmem_to_hbm [thread:$0]  (%p562_p4), %s605_s6, 16, %s610_s18, %s255_s20  }
 0x2c8 PF: > { %p364_p2 = scmp.ge.s32.totalorder %s501_s14, 2  ;;  %s279_s4 = sand.u32 1, %s481_s9  }
 0x2c9   : > { %s280_s5 = scalar_lea.sflag [#allocation6], %s279_s4 }
 0x2ca   : > { %p361_p3 = pnand %p364_p2, %p569_p8 }
 0x2cc   : > { %476 = dma.done.wait (!%p361_p3), %s280_s5, 16  }
 0x2cd   : > { %478 = vsyncadd (!%p361_p3), %s280_s5, 4294967280  ;;  %s15_s14 = sadd.s32 1, %s501_s14   ;;  %s660_s9 = smov %s485_s10 }
 0x2ce   : > { %p12_p5 = scmp.ge.s32.totalorder %s15_s14, 5   ;;  %s661_s10 = smov %s489_s11 }
 0x2cf   : > { %s662_s11 = smov %s575_s22  ;;  %s663_s12 = smov %s497_s13 }
 0x2d0   : > { %s664_s13 = smov %s666_s17  ;;  %14 = sbr.rel (!%p12_p5) target bundleno = 4 (0x4), region = 74 }
 0x2d7   :  { %284 = vsyncpa [#allocation6], 1 }
 0x2d8   :  { %286 = vsyncpa [#allocation6 + $0x1], 1 }

</bundles_post_ra>
